<compile_context>
chip_gen: v6e
topology: v6e:2x2x1
jax: 0.10.0
libtpu: 0.0.40
codegen_flags: <defaults>
</compile_context>

<pallas_src>
import functools

import jax
import jax.numpy as jnp
from jax.experimental import pallas as pl
from jax.experimental.pallas import tpu as pltpu

DROPOUT_P = 0.1


def _sdpa_kernel(scale_smem, q_ref, k_ref, v_ref, keep_ref, o_ref,
                 m_sc, l_sc, acc_sc, *, dropout_p, dot_dtype):
    # scale_smem: (B,) f32 in SMEM (scalar prefetch)
    # q_ref: (1, tq, D)  k_ref: (1, tk, D)  v_ref: (1, tk, Dv)
    # keep_ref: (1, tq, tk) int8   o_ref: (1, tq, Dv)
    # scratch: m_sc/l_sc (1, tq, 1) f32, acc_sc (1, tq, Dv) f32
    b = pl.program_id(0)
    kv = pl.program_id(2)

    @pl.when(kv == 0)
    def _():
        m_sc[...] = jnp.full_like(m_sc, -jnp.inf)
        l_sc[...] = jnp.zeros_like(l_sc)
        acc_sc[...] = jnp.zeros_like(acc_sc)

    scale = scale_smem[b]  # f32 scalar from SMEM

    # qk / (1/scale) == (q * scale) @ k^T  (fold scale into q: O(tq*D))
    qs = (q_ref[...] * scale).astype(dot_dtype)
    k = k_ref[...].astype(dot_dtype)

    # Batched q @ k^T contracting the last dims (no explicit transpose).
    s = jax.lax.dot_general(
        qs, k,
        dimension_numbers=(((2,), (2,)), ((0,), (0,))),
        preferred_element_type=jnp.float32,
    )  # (1, tq, tk) f32

    # Online softmax update.
    m_prev = m_sc[...]
    m_new = jnp.maximum(m_prev, jnp.max(s, axis=-1, keepdims=True))
    alpha = jnp.exp(m_prev - m_new)
    p = jnp.exp(s - m_new)

    # Softmax denominator uses the UNmasked numerator (softmax precedes dropout).
    l_sc[...] = alpha * l_sc[...] + jnp.sum(p, axis=-1, keepdims=True)

    # Dropout mask (1/(1-p) rescale deferred to the per-row coefficient).
    keep = keep_ref[...].astype(jnp.float32)
    pm = (p * keep).astype(dot_dtype)

    acc_sc[...] = alpha * acc_sc[...] + jax.lax.dot_general(
        pm, v_ref[...].astype(dot_dtype),
        dimension_numbers=(((2,), (1,)), ((0,), (0,))),
        preferred_element_type=jnp.float32,
    )
    m_sc[...] = m_new

    @pl.when(kv == pl.num_programs(2) - 1)
    def _():
        coef = (1.0 / (1.0 - dropout_p)) * pl.reciprocal(l_sc[...], approx=True)
        o_ref[...] = (acc_sc[...] * coef).astype(o_ref.dtype)


def sdpa_pallas(query, key, value, scale_factor, keep_mask, *,
                dropout_p=DROPOUT_P, tq=None, tk=None,
                dot_dtype=jnp.bfloat16):
    B, Lq, D = query.shape
    Bk, Lk, Dk = key.shape
    Bv, Lkv, Dv = value.shape
    assert Bk == B and Bv == B and Dk == D and Lkv == Lk
    assert scale_factor.shape == (B, 1, 1)
    assert keep_mask.shape == (B, Lq, Lk)

    # Mask as int8 (callers should already pass int8/bool to save HBM bytes).
    if keep_mask.dtype != jnp.int8:
        keep_mask = keep_mask.astype(jnp.int8)

    # Per-batch scale -> scalar prefetch (SMEM), not a (1,1,1) VMEM tile stream.
    scale_flat = scale_factor.reshape(B).astype(jnp.float32)

    # Tile defaults: 128 (lane/MXU friendly) at real sizes; full extent for
    # small dims (BlockSpec rule: sub-(8,128) tiles must equal the full dim).
    if tq is None:
        tq = Lq if Lq < 128 else 128
    if tk is None:
        tk = Lk if Lk < 128 else 128
    assert Lq % tq == 0 and Lk % tk == 0

    grid = (B, Lq // tq, Lk // tk)

    kernel = functools.partial(_sdpa_kernel, dropout_p=dropout_p,
                               dot_dtype=dot_dtype)

    return pl.pallas_call(
        kernel,
        out_shape=jax.ShapeDtypeStruct((B, Lq, Dv), query.dtype),
        grid_spec=pltpu.PrefetchScalarGridSpec(
            num_scalar_prefetch=1,
            grid=grid,
            # index_maps receive the scalar-prefetch ref as a trailing arg.
            in_specs=[
                pl.BlockSpec((1, tq, D), lambda b, q, kv, sc: (b, q, 0)),
                pl.BlockSpec((1, tk, D), lambda b, q, kv, sc: (b, kv, 0)),
                pl.BlockSpec((1, tk, Dv), lambda b, q, kv, sc: (b, kv, 0)),
                pl.BlockSpec((1, tq, tk), lambda b, q, kv, sc: (b, q, kv)),
            ],
            out_specs=pl.BlockSpec((1, tq, Dv), lambda b, q, kv, sc: (b, q, 0)),
            scratch_shapes=[
                pltpu.VMEM((1, tq, 1), jnp.float32),   # running max m
                pltpu.VMEM((1, tq, 1), jnp.float32),   # running denom l
                pltpu.VMEM((1, tq, Dv), jnp.float32),  # output accumulator
            ],
        ),
        compiler_params=pltpu.CompilerParams(
            # batch & Lq independent (megacore-shardable); Lk is the reduction.
            dimension_semantics=("parallel", "parallel", "arbitrary"),
            vmem_limit_bytes=48 * 1024 * 1024,
        ),
    )(scale_flat, query, key, value, keep_mask)


def sdpa_reference(query, key, value, scale_factor, keep_mask, dropout_p):
    qk = jnp.einsum("bqd,bkd->bqk", query, key, precision="highest")
    inv_scale = 1.0 / scale_factor
    scaled = qk / inv_scale
    sm = jax.nn.softmax(scaled, axis=-1)
    drop = jnp.where(keep_mask > 0, sm / (1.0 - dropout_p), 0.0)
    return jnp.einsum("bqk,bkd->bqd", drop, value, precision="highest")


if __name__ == "__main__":
    # Small, self-consistent attention shapes (the torch snippet's literal
    # example tensors are shape-inconsistent; we pick compatible ones).
    B, Lq, Lk, D, Dv = 2, 8, 16, 32, 32

    root = jax.random.PRNGKey(0)
    kq, kk, kv_, ks, kd = jax.random.split(root, 5)
    query = jax.random.normal(kq, (B, Lq, D), dtype=jnp.float32)
    key = jax.random.normal(kk, (B, Lk, D), dtype=jnp.float32)
    value = jax.random.normal(kv_, (B, Lk, Dv), dtype=jnp.float32)
    # Positive, softmax-friendly per-batch scales (~1/sqrt(D) magnitude).
    scale_factor = jax.random.uniform(ks, (B, 1, 1), dtype=jnp.float32,
                                      minval=0.1, maxval=0.3)
    # Dropout keep-mask (prob keep = 1 - p), host-generated, int8 to cut HBM bytes.
    keep_mask = jax.random.bernoulli(
        kd, 1.0 - DROPOUT_P, (B, Lq, Lk)).astype(jnp.int8)

    out = sdpa_pallas(query, key, value, scale_factor, keep_mask)
    jax.block_until_ready(out)
    assert out.shape == (B, Lq, Dv)

    ref = sdpa_reference(query, key, value, scale_factor, keep_mask, DROPOUT_P)
    # bf16 MXU operands -> few-percent tolerance; algebraic bugs would be O(0.1+).
    err = jnp.max(jnp.abs(out - ref))
    assert jnp.allclose(out, ref, rtol=5e-2, atol=5e-2), f"mismatch, max err {err}"

    print("KERNEL_OK")
</pallas_src>

<mosaic_0001>
module attributes {stable_mosaic.version = 11 : i64} {
  func.func @_sdpa_kernel(%arg0: i32, %arg1: i32, %arg2: i32, %arg3: memref<2xf32, #tpu.memory_space<smem>>, %arg4: memref<1x8x32xf32, #tpu.memory_space<vmem>>, %arg5: memref<1x16x32xf32, #tpu.memory_space<vmem>>, %arg6: memref<1x16x32xf32, #tpu.memory_space<vmem>>, %arg7: memref<1x8x16xi8, #tpu.memory_space<vmem>>, %arg8: memref<1x8x32xf32, #tpu.memory_space<vmem>>, %arg9: memref<1x8x1xf32, #tpu.memory_space<vmem>>, %arg10: memref<1x8x1xf32, #tpu.memory_space<vmem>>, %arg11: memref<1x8x32xf32, #tpu.memory_space<vmem>>) attributes {dimension_semantics = [#tpu.dimension_semantics<parallel>, #tpu.dimension_semantics<parallel>, #tpu.dimension_semantics<arbitrary>], iteration_bounds = array<i64: 2, 1, 1>, scalar_prefetch = 1 : i64, scratch_operands = 3 : i64, tpu.core_type = #tpu.core_type<tc>, window_params = [{transform_indices = @transform_0, window_bounds = array<i64: 1, 8, 32>}, {transform_indices = @transform_1, window_bounds = array<i64: 1, 16, 32>}, {transform_indices = @transform_2, window_bounds = array<i64: 1, 16, 32>}, {transform_indices = @transform_3, window_bounds = array<i64: 1, 8, 16>}, {transform_indices = @transform_4, window_bounds = array<i64: 1, 8, 32>}]} {
    %c0_i32 = arith.constant 0 : i32
    %0 = arith.cmpi eq, %arg2, %c0_i32 : i32
    %1 = arith.extui %0 : i1 to i32
    %c0_i32_0 = arith.constant 0 : i32
    %2 = arith.cmpi ne, %1, %c0_i32_0 : i32
    scf.if %2 {
      %cst_35 = arith.constant 0xFF800000 : f32
      %43 = vector.broadcast %cst_35 : f32 to vector<1x8x1xf32>
      %c0_36 = arith.constant 0 : index
      %c0_37 = arith.constant 0 : index
      %c0_38 = arith.constant 0 : index
      %44 = vector.load %arg9[%c0_36, %c0_37, %c0_38] : memref<1x8x1xf32, #tpu.memory_space<vmem>>, vector<1x8x1xf32>
      tpu.vector_store %arg9[%c0_36, %c0_37, %c0_38], %43 {strides = array<i32>} : memref<1x8x1xf32, #tpu.memory_space<vmem>>, vector<1x8x1xf32>,
      %cst_39 = arith.constant 0.000000e+00 : f32
      %45 = vector.broadcast %cst_39 : f32 to vector<1x8x1xf32>
      %c0_40 = arith.constant 0 : index
      %c0_41 = arith.constant 0 : index
      %c0_42 = arith.constant 0 : index
      %46 = vector.load %arg10[%c0_40, %c0_41, %c0_42] : memref<1x8x1xf32, #tpu.memory_space<vmem>>, vector<1x8x1xf32>
      tpu.vector_store %arg10[%c0_40, %c0_41, %c0_42], %45 {strides = array<i32>} : memref<1x8x1xf32, #tpu.memory_space<vmem>>, vector<1x8x1xf32>,
      %cst_43 = arith.constant 0.000000e+00 : f32
      %47 = vector.broadcast %cst_43 : f32 to vector<1x8x32xf32>
      %c0_44 = arith.constant 0 : index
      %c0_45 = arith.constant 0 : index
      %c0_46 = arith.constant 0 : index
      %48 = vector.load %arg11[%c0_44, %c0_45, %c0_46] : memref<1x8x32xf32, #tpu.memory_space<vmem>>, vector<1x8x32xf32>
      tpu.vector_store %arg11[%c0_44, %c0_45, %c0_46], %47 {strides = array<i32>} : memref<1x8x32xf32, #tpu.memory_space<vmem>>, vector<1x8x32xf32>,
    } else {
    }
    %3 = arith.index_cast %arg0 : i32 to index
    %4 = memref.load %arg3[%3] : memref<2xf32, #tpu.memory_space<smem>>
    %c0 = arith.constant 0 : index
    %c0_1 = arith.constant 0 : index
    %c0_2 = arith.constant 0 : index
    %5 = vector.load %arg4[%c0, %c0_1, %c0_2] : memref<1x8x32xf32, #tpu.memory_space<vmem>>, vector<1x8x32xf32>
    %6 = vector.broadcast %4 : f32 to vector<1x8x32xf32>
    %7 = arith.mulf %5, %6 : vector<1x8x32xf32>
    %8 = arith.truncf %7 : vector<1x8x32xf32> to vector<1x8x32xbf16>
    %c0_3 = arith.constant 0 : index
    %c0_4 = arith.constant 0 : index
    %c0_5 = arith.constant 0 : index
    %9 = vector.load %arg5[%c0_3, %c0_4, %c0_5] : memref<1x16x32xf32, #tpu.memory_space<vmem>>, vector<1x16x32xf32>
    %10 = arith.truncf %9 : vector<1x16x32xf32> to vector<1x16x32xbf16>
    %cst = arith.constant dense<0.000000e+00> : vector<1x8x16xf32>
    %11 = tpu.matmul %8, %10, %cst {dimension_numbers = #tpu.dot_dimension_numbers<[2], [2], [1], [1], [0, 0, 0, 1, 1, 1], [0], [0]>} : vector<1x8x32xbf16>, vector<1x16x32xbf16>, vector<1x8x16xf32> -> vector<1x8x16xf32>
    %c0_6 = arith.constant 0 : index
    %c0_7 = arith.constant 0 : index
    %c0_8 = arith.constant 0 : index
    %12 = vector.load %arg9[%c0_6, %c0_7, %c0_8] : memref<1x8x1xf32, #tpu.memory_space<vmem>>, vector<1x8x1xf32>
    %cst_9 = arith.constant dense<0xFF800000> : vector<1x8xf32>
    %13 = vector.multi_reduction <maximumf>, %11, %cst_9 [2] : vector<1x8x16xf32> to vector<1x8xf32>
    %14 = vector.shape_cast %13 : vector<1x8xf32> to vector<1x8x1xf32>
    %15 = arith.maximumf %12, %14 : vector<1x8x1xf32>
    %16 = arith.subf %12, %15 : vector<1x8x1xf32>
    %17 = math.exp %16 : vector<1x8x1xf32>
    %18 = vector.broadcast %15 : vector<1x8x1xf32> to vector<1x8x16xf32>
    %19 = arith.subf %11, %18 : vector<1x8x16xf32>
    %20 = math.exp %19 : vector<1x8x16xf32>
    %c0_10 = arith.constant 0 : index
    %c0_11 = arith.constant 0 : index
    %c0_12 = arith.constant 0 : index
    %21 = vector.load %arg10[%c0_10, %c0_11, %c0_12] : memref<1x8x1xf32, #tpu.memory_space<vmem>>, vector<1x8x1xf32>
    %22 = arith.mulf %17, %21 : vector<1x8x1xf32>
    %cst_13 = arith.constant dense<0.000000e+00> : vector<1x8xf32>
    %23 = vector.multi_reduction <add>, %20, %cst_13 [2] : vector<1x8x16xf32> to vector<1x8xf32>
    %24 = vector.shape_cast %23 : vector<1x8xf32> to vector<1x8x1xf32>
    %25 = arith.addf %22, %24 : vector<1x8x1xf32>
    %c0_14 = arith.constant 0 : index
    %c0_15 = arith.constant 0 : index
    %c0_16 = arith.constant 0 : index
    %26 = vector.load %arg10[%c0_14, %c0_15, %c0_16] : memref<1x8x1xf32, #tpu.memory_space<vmem>>, vector<1x8x1xf32>
    tpu.vector_store %arg10[%c0_14, %c0_15, %c0_16], %25 {strides = array<i32>} : memref<1x8x1xf32, #tpu.memory_space<vmem>>, vector<1x8x1xf32>,
    %c0_17 = arith.constant 0 : index
    %c0_18 = arith.constant 0 : index
    %c0_19 = arith.constant 0 : index
    %27 = vector.load %arg7[%c0_17, %c0_18, %c0_19] : memref<1x8x16xi8, #tpu.memory_space<vmem>>, vector<1x8x16xi8>
    %28 = arith.sitofp %27 : vector<1x8x16xi8> to vector<1x8x16xf32>
    %29 = arith.mulf %20, %28 : vector<1x8x16xf32>
    %30 = arith.truncf %29 : vector<1x8x16xf32> to vector<1x8x16xbf16>
    %c0_20 = arith.constant 0 : index
    %c0_21 = arith.constant 0 : index
    %c0_22 = arith.constant 0 : index
    %31 = vector.load %arg11[%c0_20, %c0_21, %c0_22] : memref<1x8x32xf32, #tpu.memory_space<vmem>>, vector<1x8x32xf32>
    %32 = vector.broadcast %17 : vector<1x8x1xf32> to vector<1x8x32xf32>
    %33 = arith.mulf %32, %31 : vector<1x8x32xf32>
    %c0_23 = arith.constant 0 : index
    %c0_24 = arith.constant 0 : index
    %c0_25 = arith.constant 0 : index
    %34 = vector.load %arg6[%c0_23, %c0_24, %c0_25] : memref<1x16x32xf32, #tpu.memory_space<vmem>>, vector<1x16x32xf32>
    %35 = arith.truncf %34 : vector<1x16x32xf32> to vector<1x16x32xbf16>
    %cst_26 = arith.constant dense<0.000000e+00> : vector<1x8x32xf32>
    %36 = tpu.matmul %30, %35, %cst_26 {dimension_numbers = #tpu.dot_dimension_numbers<[2], [1], [1], [2], [0, 0, 0, 1, 1, 2], [0], [0]>} : vector<1x8x16xbf16>, vector<1x16x32xbf16>, vector<1x8x32xf32> -> vector<1x8x32xf32>
    %37 = arith.addf %33, %36 : vector<1x8x32xf32>
    %c0_27 = arith.constant 0 : index
    %c0_28 = arith.constant 0 : index
    %c0_29 = arith.constant 0 : index
    %38 = vector.load %arg11[%c0_27, %c0_28, %c0_29] : memref<1x8x32xf32, #tpu.memory_space<vmem>>, vector<1x8x32xf32>
    tpu.vector_store %arg11[%c0_27, %c0_28, %c0_29], %37 {strides = array<i32>} : memref<1x8x32xf32, #tpu.memory_space<vmem>>, vector<1x8x32xf32>,
    %c0_30 = arith.constant 0 : index
    %c0_31 = arith.constant 0 : index
    %c0_32 = arith.constant 0 : index
    %39 = vector.load %arg9[%c0_30, %c0_31, %c0_32] : memref<1x8x1xf32, #tpu.memory_space<vmem>>, vector<1x8x1xf32>
    tpu.vector_store %arg9[%c0_30, %c0_31, %c0_32], %15 {strides = array<i32>} : memref<1x8x1xf32, #tpu.memory_space<vmem>>, vector<1x8x1xf32>,
    %c0_i32_33 = arith.constant 0 : i32
    %40 = arith.cmpi eq, %arg2, %c0_i32_33 : i32
    %41 = arith.extui %40 : i1 to i32
    %c0_i32_34 = arith.constant 0 : i32
    %42 = arith.cmpi ne, %41, %c0_i32_34 : i32
    scf.if %42 {
      %c0_35 = arith.constant 0 : index
      %c0_36 = arith.constant 0 : index
      %c0_37 = arith.constant 0 : index
      %43 = vector.load %arg10[%c0_35, %c0_36, %c0_37] : memref<1x8x1xf32, #tpu.memory_space<vmem>>, vector<1x8x1xf32>
      %44 = tpu.reciprocal %43 {approx = true} : vector<1x8x1xf32> -> vector<1x8x1xf32>
      %cst_38 = arith.constant 1.11111116 : f32
      %45 = vector.broadcast %cst_38 : f32 to vector<1x8x1xf32>
      %46 = arith.mulf %45, %44 : vector<1x8x1xf32>
      %c0_39 = arith.constant 0 : index
      %c0_40 = arith.constant 0 : index
      %c0_41 = arith.constant 0 : index
      %47 = vector.load %arg11[%c0_39, %c0_40, %c0_41] : memref<1x8x32xf32, #tpu.memory_space<vmem>>, vector<1x8x32xf32>
      %48 = vector.broadcast %46 : vector<1x8x1xf32> to vector<1x8x32xf32>
      %49 = arith.mulf %47, %48 : vector<1x8x32xf32>
      %c0_42 = arith.constant 0 : index
      %c0_43 = arith.constant 0 : index
      %c0_44 = arith.constant 0 : index
      %50 = vector.load %arg8[%c0_42, %c0_43, %c0_44] : memref<1x8x32xf32, #tpu.memory_space<vmem>>, vector<1x8x32xf32>
      tpu.vector_store %arg8[%c0_42, %c0_43, %c0_44], %49 {strides = array<i32>} : memref<1x8x32xf32, #tpu.memory_space<vmem>>, vector<1x8x32xf32>,
    } else {
    }
    return
  }
  func.func @transform_0(%arg0: i32, %arg1: i32, %arg2: i32, %arg3: memref<2xf32, #tpu.memory_space<smem>>) -> (i32, i32, i32) {
    %c0_i32 = arith.constant 0 : i32
    %c0_i32_0 = arith.constant 0 : i32
    return %arg0, %arg1, %c0_i32 : i32, i32, i32
  }
  func.func @transform_1(%arg0: i32, %arg1: i32, %arg2: i32, %arg3: memref<2xf32, #tpu.memory_space<smem>>) -> (i32, i32, i32) {
    %c0_i32 = arith.constant 0 : i32
    %c0_i32_0 = arith.constant 0 : i32
    return %arg0, %arg2, %c0_i32 : i32, i32, i32
  }
  func.func @transform_2(%arg0: i32, %arg1: i32, %arg2: i32, %arg3: memref<2xf32, #tpu.memory_space<smem>>) -> (i32, i32, i32) {
    %c0_i32 = arith.constant 0 : i32
    %c0_i32_0 = arith.constant 0 : i32
    return %arg0, %arg2, %c0_i32 : i32, i32, i32
  }
  func.func @transform_3(%arg0: i32, %arg1: i32, %arg2: i32, %arg3: memref<2xf32, #tpu.memory_space<smem>>) -> (i32, i32, i32) {
    %c0_i32 = arith.constant 0 : i32
    return %arg0, %arg1, %arg2 : i32, i32, i32
  }
  func.func @transform_4(%arg0: i32, %arg1: i32, %arg2: i32, %arg3: memref<2xf32, #tpu.memory_space<smem>>) -> (i32, i32, i32) {
    %c0_i32 = arith.constant 0 : i32
    %c0_i32_0 = arith.constant 0 : i32
    return %arg0, %arg1, %c0_i32 : i32, i32, i32
  }
}

</mosaic_0001>

<bundles_post_ra>
// kernel: tpu_custom_call.1
= control target key start
LH: loop header
LB: loop body
LE: loop exit
PB: predicated region body
PF: predicated region fallthrough
CT: control target
= control target key end

     0   :  { %s1007_s18 = smov [#allocation6]   ;;  %s1272_s0 = inlined_call_operand.hbm [shape: f32[2], index: 0, kind: input, shape index: {}]   ;;  %s1273_s1 = inlined_call_operand.hbm [shape: f32[2,8,32], index: 1, kind: input, shape index: {}]   ;;  %s1274_s2 = inlined_call_operand.hbm [shape: f32[2,16,32], index: 2, kind: input, shape index: {}]   ;;  %s1275_s3 = inlined_call_operand.hbm [shape: f32[2,16,32], index: 3, kind: input, shape index: {}]   ;;  %s1276_s4 = inlined_call_operand.vmem [shape: s8[2,8,16], index: 4, kind: input, shape index: {}]   ;;  %s1277_s5 = inlined_call_operand.hbm [shape: f32[2,8,32], index: 5, kind: output, shape index: {}]  }
   0x1   :  { %1282 = sst [smem:[#allocation22_spill]] %s1274_s2 }
   0x2   :  { %11 = dma.hbm_to_smem %s1272_s0, 16, %s1007_s18, [#allocation5] }
   0x3   :  { %969 = dma.done.wait [#allocation5], 16 }
   0x4   :  { %970 = vsyncadd [#allocation5], 4294967280 }
   0x5   :  { %13 = sfence }
   0x6   :  { %14 = vsyncpa [#allocation8], 0 }
   0x7   :  { %16 = vsyncpa [#allocation8 + $0x1], 0 }
   0x8   :  { %17 = vsyncpa [#allocation11], 0 }
   0x9   :  { %19 = vsyncpa [#allocation11 + $0x1], 0 }
   0xa   :  { %20 = vsyncpa [#allocation9], 0 }
   0xb   :  { %22 = vsyncpa [#allocation9 + $0x1], 0  ;;  %s1051_s21 = smov 0   ;;  %s1053_s22 = smov 0  }
   0xc   :  { %s1055_s23 = smov 0   ;;  %s1057_s24 = smov 0  }
   0xd   :  { %s1059_s25 = smov 0   ;;  %s1061_s0 = smov 0  }
   0xe LB: > { %1283 = sst [smem:[#allocation18_spill]] %s993_s23  ;;  %s1082_s26 = sadd.s32 4294967295, %s1005_s0   ;;  %s1005_s0 = sphi %s1061_s0, %s28_s0   ;;  %s1001_s25 = sphi %s1059_s25, %s1303_s25   ;;  %s997_s24 = sphi %s1057_s24, %s1302_s24   ;;  %s993_s23 = sphi %s1055_s23, %s1298_s23   ;;  %s989_s22 = sphi %s1053_s22, %s1301_s22   ;;  %s985_s21 = sphi %s1051_s21, %s1300_s21  }
   0xf   : > { %s699_s27 = sadd.s32 4294967294, %s1005_s0   ;;  %s47_s28 = sadd.s32 1, %s1001_s25 }
  0x10   : > { %s56_s29 = sadd.s32 1, %s993_s23  ;;  %p49_p0 = scmp.ge.s32.totalorder %s47_s28, 2 }
  0x11   : > { %p63_p1 = scmp.ne.s32.totalorder %s993_s23, %s989_s22  ;;  %p64_p2 = scmp.eq.s32.totalorder %s1005_s0, 0 }
  0x12   : > { %p69_p3 = scmp.ne.s32.totalorder %s989_s22, %s985_s21  ;;  %s1305_s28 = smov (%p49_p0, %s47_s28), 0 }
  0x13   : > { %1284 = sst [smem:[#allocation19_spill]] %s1305_s28  ;;  %p1094_p4 = por %p64_p2, %p63_p1 }
  0x14   : > { %p70_p5 = scmp.eq.s32.totalorder %s1082_s26, 0  ;;  %s51_s6 = ssub.s32 %s1001_s25, %s1305_s28 }
  0x15   : > { %p181_p6 = scmp.eq.s32.totalorder %s1082_s26, 1  ;;  %p54_p7 = scmp.eq.s32.totalorder %s51_s6, 0 }
  0x16   : > { %p1102_p8 = por %p70_p5, %p69_p3  ;;  %p187_p10 = scmp.eq.s32.totalorder %s699_s27, 1 }
  0x17   : > { %p1106_p9 = por %p181_p6, %p63_p1  ;;  %p762_p13 = scmp.lt.s32.totalorder %s1005_s0, 2 }
  0x18   : > { %s1111_s9 = scalar_select %p54_p7, %s993_s23, %s56_s29  }
  0x19   : > { %p1113_p11 = por %p187_p10, %p69_p3  ;;  %s1120_s11 = sand.u32 1, %s993_s23  }
  0x1a   : > { %1288 = sst [smem:[#allocation20_spill]] %s1111_s9  ;;  %s226_s12 = sand.u32 1, %s1005_s0  }
  0x1b   : > { %s1289_s10 = scalar_select %p1113_p11, 1, 0 }
  0x1c   : > { %s704_s13 = sshll.u32 %s1120_s11, 4  ;;  %p1126_p0 = pnand %p762_p13, %p1094_p4 }
  0x1d   : > { %1290 = sst [smem:[#allocation21_spill]] %s1289_s10  ;;  %s722_s15 = sshll.u32 %s1001_s25, 8 }
  0x1e   : > { %s1292_s2 = sld [smem:[#allocation22_spill]]  ;;  %s230_s19 = scalar_lea.vmem [#allocation10], %s704_s13 }
  0x1f   : > { %s239_s20 = sshll.u32 %s230_s19, 4  ;;  %s1136_s27 = scalar_lea.sflag [#allocation11], %s226_s12  ;;  %s240_s20 = int_to_ptr.vmem [resolvable:$true] %s239_s20 }
  0x20   : > { %p837_p1 = pneg %p1126_p0  ;;  %s848_s29 = scalar_lea.vmem %s240_s20, 256 }
  0x21   : > { %p849_p2 = scmp.ne.s32.totalorder %s240_s20, %s848_s29  ;;  %s1008_s30 = smov [#allocation10]  }
  0x22   : > { %s853_s6 = sshll.u32 %s1008_s30, 4  ;;  %s854_s6 = int_to_ptr.vmem [resolvable:$false] %s853_s6 }
  0x23   : > { %p851_p3 = pnand %p849_p2, %p837_p1  ;;  %s855_s28 = scalar_lea.vmem %s854_s6, 512 }
  0x24   : > { %s238_s18 = scalar_lea.hbm %s1292_s2, %s722_s15  ;;  %p856_p5 = scmp.lt.s32.totalorder %s240_s20, %s854_s6 }
  0x25   : > { %p852_p4 = pneg %p851_p3  ;;  %p857_p6 = scmp.lt.s32.totalorder %s855_s28, %s848_s29 }
  0x27   : > { %p858_p7 = por %p857_p6, %p856_p5 }
  0x29   : > { %p859_p10 = pnand %p858_p7, %p852_p4 }
  0x2b   : > { %862 = shalt.err (!%p859_p10)
}
  0x2c   : > { %s1281_s16 = smov 128   ;;  %s1010_s12 = smov 8  }
  0x2d   : > { %754 = dma.hbm_to_vmem [thread:$0]  (!%p1126_p0), %s238_s18, 256, %s240_s20, %s1136_s27, %s1281_s16, %s1281_s16, %s1010_s12  }
  0x2e   : > { %s1152_s19 = scalar_lea.hbm %s1275_s3, %s722_s15  ;;  %p710_p13 = scmp.ge.s32.totalorder %s1005_s0, 1 }
  0x2f   : > { %s253_s29 = scalar_lea.vmem [#allocation12], %s704_s13  ;;  %p283_p2 = scmp.lt.s32.totalorder %s1005_s0, 3 }
  0x30   : > { %s262_s30 = sshll.u32 %s253_s29, 4  ;;  %s702_s2 = sshll.u32 %s1120_s11, 3  ;;  %s1167_s30 = int_to_ptr.vmem [resolvable:$true] %s262_s30 }
  0x31   : > { %p1158_p3 = pnand %p710_p13, %p283_p2  ;;  %s703_s9 = sshll.u32 %s1001_s25, 7 }
  0x32   : > { %s217_s18 = scalar_lea.hbm %s1273_s1, %s703_s9  ;;  %s211_s15 = scalar_lea.vmem [#allocation7], %s702_s2 }
  0x33   : > { %s219_s20 = sshll.u32 %s211_s15, 4  ;;  %s208_s17 = scalar_lea.sflag [#allocation8], %s1120_s11  ;;  %s220_s20 = int_to_ptr.vmem [resolvable:$true] %s219_s20 }
  0x34   : > { %s876_s28 = scalar_lea.vmem %s220_s20, 128  ;;  %s1011_s13 = smov [#allocation7]  }
  0x35   : > { %p877_p4 = scmp.ne.s32.totalorder %s220_s20, %s876_s28  ;;  %s881_s29 = sshll.u32 %s1011_s13, 4  ;;  %s882_s29 = int_to_ptr.vmem [resolvable:$false] %s881_s29 }
  0x36   : > { %s883_s16 = scalar_lea.vmem %s882_s29, 256  ;;  %p884_p7 = scmp.lt.s32.totalorder %s220_s20, %s882_s29 }
  0x37   : > { %p879_p5 = pnand %p877_p4, %p837_p1  ;;  %p885_p10 = scmp.lt.s32.totalorder %s883_s16, %s876_s28 }
  0x39   : > { %p880_p6 = pneg %p879_p5  ;;  %p886_p13 = por %p885_p10, %p884_p7 }
  0x3b   : > { %p887_p2 = pnand %p886_p13, %p880_p6 }
  0x3d   : > { %890 = shalt.err (!%p887_p2)
}
  0x3e   : > { %751 = dma.hbm_to_vmem [thread:$0]  (!%p1126_p0), %s217_s18, 128, %s220_s20, %s208_s17  }
  0x3f   : > { %s904_s2 = scalar_lea.vmem %s1167_s30, 256  ;;  %s1012_s23 = smov [#allocation12]  }
  0x40   : > { %p905_p12 = scmp.ne.s32.totalorder %s1167_s30, %s904_s2  ;;  %s909_s9 = sshll.u32 %s1012_s23, 4  ;;  %s910_s9 = int_to_ptr.vmem [resolvable:$false] %s909_s9 }
  0x41   : > { %s911_s10 = scalar_lea.vmem %s910_s9, 512  ;;  %p912_p7 = scmp.lt.s32.totalorder %s1167_s30, %s910_s9 }
  0x42   : > { %p907_p4 = pnand %p905_p12, %p837_p1  ;;  %p913_p6 = scmp.lt.s32.totalorder %s911_s10, %s904_s2 }
  0x44   : > { %p908_p5 = pneg %p907_p4  ;;  %p914_p10 = por %p913_p6, %p912_p7 }
  0x46   : > { %p915_p13 = pnand %p914_p10, %p908_p5 }
  0x48   : > { %918 = shalt.err (!%p915_p13)
}
  0x49   : > { %s1294_s11 = smov 128   ;;  %287 = sbr.rel (%p1158_p3) target bundleno = 874 (0x36a), region = 36 }
  0x4a   : > { %757 = dma.hbm_to_vmem [thread:$0]  (!%p1126_p0), %s1152_s19, 256, %s1167_s30, %s1136_s27, %s1294_s11, %s1294_s11, %s1010_s12  }
  0x4b   : > { %s1192_s16 = sand.u32 (!%p1158_p3), 1, %s989_s22  }
  0x4c   : > { %s711_s18 = sshll.u32 (!%p1158_p3), %s1192_s16, 3  ;;  %s290_s15 = scalar_lea.sflag (!%p1158_p3), [#allocation8], %s1192_s16 }
  0x4d   : > { %s293_s14 = scalar_lea.vmem (!%p1158_p3), [#allocation7], %s711_s18 }
  0x4e   : > { %972 = dma.done.wait (%p1102_p8), %s290_s15, 128  }
  0x4f   : > { %974 = vsyncadd (%p1102_p8), %s290_s15, 4294967168  ;;  %s298_s27 = sand.u32 1, %s1082_s26   ;;  %s712_s12 = sshll.u32 %s1192_s16, 4 }
  0x50   : > { %s299_s19 = scalar_lea.sflag [#allocation11], %s298_s27  ;;  %s302_s30 = scalar_lea.vmem [#allocation10], %s712_s12 }
  0x51   : > { %976 = dma.done.wait (%p1102_p8), %s299_s19, 512  }
  0x52   : > { %978 = vsyncadd (%p1102_p8), %s299_s19, 4294966784  ;;  %vm376_vm0 = vcmask 261120   ;;  %v1013_v0 = vmov 0.0   ;;  %vm1014_vm1 = vmmov 0   ;;  %s378_s6 = sld [smem:[#allocation6 + %s997_s24]]  ;;  %v383_v1 = vld [vmem:[%s302_s30] sm:$0xff] }
  0x53   : > { %728 = vmatprep.subr.bf16.mxu0 %v1013_v0  ;;  %377 = vst.msk [vmem:[#allocation4] sm:$0xff] %vm376_vm0, %v1013_v0  ;;  %730 = vmatprep.mubr.msk.bf16.mxu0 %vm1014_vm1, %v1013_v0  ;;  %v384_v2 = vld [vmem:[%s302_s30 + $0x8] sm:$0xff]  ;;  %vm373_vm2 = vcmask 7168   ;;  %v1015_v9 = vmov -inf   ;;  %vm434_vm3 = vcmask 130048   ;;  %v1016_v15 = vmov 0  }
  0x54   : > { %734 = vmatprep.subr.bf16.mxu1 %v1013_v0  ;;  %736 = vmatprep.mubr.msk.bf16.mxu1 %vm1014_vm1, %v1013_v0  ;;  %v379_v3 = vld [vmem:[%s293_s14] sm:$0xff]  ;;  %v385_v5 = vpack.c.bf16 %v384_v2, %v383_v1  ;;  %374 = vst.msk [vmem:[#allocation2] sm:$0xff] %vm373_vm2, %v1015_v9  ;;  %375 = vst.msk [vmem:[#allocation3] sm:$0xff] %vm373_vm2, %v1013_v0  ;;  %s311_s26 = scalar_lea.vmem [#allocation12], %s712_s12  ;;  %p358_p8 = scmp.lt.s32.totalorder %s997_s24, 1 }
  0x55   : > { %819 = vset.pattern.permute.xlu0 %v1016_v15  ;;  %820 = vset.pattern.permute.xlu1 %v1016_v15  ;;  %v470_v20 = vld [vmem:[%s311_s26] sm:$0xff]  ;;  %v471_v21 = vld [vmem:[%s311_s26 + $0x8] sm:$0xff]  ;;  %s719_s29 = sshll.u32 %s997_s24, 7  ;;  %s355_s2 = scalar_lea.vmem [#allocation13], %s711_s18 }
  0x56   : > { %v391_v6 = vsel %vm376_vm0, %v385_v5, 0  ;;  %v472_v22 = vpack.c.bf16 %v471_v21, %v470_v20  ;;  %s359_s7 = scalar_select %p358_p8, %s997_s24, 1 }
  0x57   : > { %729 = vmatpush3.bf16.xpose.msra.mxu0 %v391_v6  ;;  %s548_s23 = sshll.u32 %s355_s2, 4  ;;  %s546_s11 = scalar_lea.hbm %s1277_s5, %s719_s29  ;;  %s549_s23 = int_to_ptr.vmem [resolvable:$true] %s548_s23 }
  0x58   : > { %v380_v4 = vstv %s378_s6  ;;  %735 = vmatpush3.bf16.msra.mxu1 %v472_v22  ;;  %s715_s20 = sshll.u32 %s359_s7, 1  ;;  %s534_s15 = scalar_lea.sflag [#allocation9], %s1192_s16 }
  0x59   : > { %v381_v7 = vmul.f32 %v380_v4, %v379_v3  ;;  %s367_s13 = scalar_lea.vmem %s1276_s4, %s715_s20  ;;  %s919_s14 = scalar_lea.vmem %s549_s23, 128 }
  0x5a   : > { %v458_v26 = vld [vmem:[%s367_s13] sm:$0x3]  ;;  %v463_v42 = vld [vmem:[#allocation4] sm:$0xff]  ;;  %p920_p12 = scmp.ne.s32.totalorder %s549_s23, %s919_s14  ;;  %s1017_s24 = smov [#allocation13]  }
  0x5b   : > { %v382_v8 = vpack.c.bf16 %v381_v7, %v381_v7  ;;  %v433_v16 = vld [vmem:[#allocation2] sm:$0xff]  ;;  %v459_v27 = vunpack.c.0.s8 %v458_v26  ;;  %v450_v35 = vld [vmem:[#allocation3] sm:$0xff]  ;;  %s923_s27 = sshll.u32 %s1017_s24, 4  ;;  %s924_s27 = int_to_ptr.vmem [resolvable:$false] %s923_s27 }
  0x5c   : > { %p921_p0 = pnand %p920_p12, %p1106_p9  ;;  %s925_s18 = scalar_lea.vmem %s924_s27, 256 }
  0x5d   : > { %v460_v28 = vcvt.s32.f32 %v459_v27  ;;  %p926_p3 = scmp.lt.s32.totalorder %s549_s23, %s924_s27  ;;  %p927_p2 = scmp.lt.s32.totalorder %s925_s18, %s919_s14 }
  0x5e   : > { %731 = vmatmul.mubr.msk.bf16.vlgmr.msra.gmra.mxu0 %vm376_vm0, %v382_v8  ;;  %p922_p1 = pneg %p921_p0 }
  0x5f   : > { %p928_p4 = por %p927_p2, %p926_p3 }
  0x61   : > { %p929_p5 = pnand %p928_p4, %p922_p1 }
 0x11e   : > { %v427_v10 = vpop.f32.mrf.mxu0 }
 0x11f   : > { %v435_v11 = vsel %vm434_vm3, %v427_v10, -inf }
 0x120   : > { %436 = vmax.xlane.f32.xlu0 %v435_v11  ;;  %v732_v12 = vpop.f32.mrf.mxu0 }
 0x122   : > { %v430_v13 = vpop.f32.mrf.mxu0 }
 0x124   : > { %v733_v14 = vpop.f32.mrf.mxu0 }
 0x1a9   : > { %v437_v17 = vpop.xlane.xlu0 %436 }
 0x1aa   : > { %v438_v18 = vmax.f32 %v433_v16, %v437_v17 }
 0x1ac   : > { %v439_v19 = vsub.f32 %v433_v16, %v438_v18  ;;  %518 = vst.msk [vmem:[#allocation2] sm:$0xff] %vm373_vm2, %v438_v18  ;;  %444 = vperm.xlu0 %819, %v438_v18  }
 0x1ae   : > { %v440_v30 = vmul.f32 1.442695, %v439_v19 }
 0x227   : > { %v445_v23 = vpop.permute.xlu0 %444 }
 0x228   : > { %v447_v24 = vsub.f32 %v427_v10, %v445_v23 }
 0x22a   : > { %v448_v25 = vmul.f32 1.442695, %v447_v24 }
 0x22c   : > { %821 = vpow2.f32 %v448_v25 }
 0x22d   : > { %823 = vpow2.f32 %v440_v30 }
 0x239   : > { %v822_v29 = vpop.eup %821 }
 0x23a   : > { %v452_v31 = vsel %vm434_vm3, %v822_v29, 0.0  ;;  %v461_v32 = vmul.f32 %v822_v29, %v460_v28  ;;  %v824_v34 = vpop.eup %823 }
 0x23b   : > { %453 = vadd.xlane.f32.xlu1 %v452_v31  ;;  %v451_v36 = vmul.f32 %v824_v34, %v450_v35 }
 0x23c   : > { %v462_v33 = vpack.c.bf16 %v461_v32, %v461_v32 }
 0x23e   : > { %737 = vmatmul.mubr.msk.bf16.vlgmr.msra.gmra.mxu1 %vm434_vm3, %v462_v33 }
 0x24c   : > { %466 = vperm.xlu1 %820, %v824_v34  }
 0x2c4   : > { %v454_v37 = vpop.xlane.xlu1 %453 }
 0x2c5   : > { %v455_v38 = vadd.f32 %v454_v37, %v451_v36 }
 0x2c7   : > { %457 = vst.msk [vmem:[#allocation3] sm:$0xff] %vm373_vm2, %v455_v38 }
 0x2c8   : > { %v467_v43 = vpop.permute.xlu1 %466 }
 0x2c9   : > { %v469_v44 = vmul.f32 %v467_v43, %v463_v42 }
 0x2ce   : > { %v522_v39 = vld [vmem:[#allocation3] sm:$0xff] }
 0x2cf   : > { %825 = vrcp.f32 %v522_v39 }
 0x2dc   : > { %v826_v40 = vpop.eup %825 }
 0x2dd   : > { %v524_v41 = vmul.f32 1.1111112, %v826_v40 }
 0x2df   : > { %528 = vperm.xlu1 %820, %v524_v41  }
 0x2fe   : > { %v510_v45 = vpop.f32.mrf.mxu1 }
 0x2ff   : > { %v516_v46 = vadd.f32 %v510_v45, %v469_v44 }
 0x300   : > { %v738_v47 = vpop.f32.mrf.mxu1 }
 0x301   : > { %517 = vst.msk [vmem:[#allocation4] sm:$0xff] %vm376_vm0, %v516_v46 }
 0x302   : > { %v513_v48 = vpop.f32.mrf.mxu1 }
 0x304   : > { %v739_v49 = vpop.f32.mrf.mxu1 }
 0x308   : > { %v525_v50 = vld [vmem:[#allocation4] sm:$0xff] }
 0x35a   : > { %v529_v51 = vpop.permute.xlu1 %528 }
 0x35b   : > { %v531_v52 = vmul.f32 %v529_v51, %v525_v50 }
 0x35d   : > { %532 = vst.msk [vmem:[%s355_s2] sm:$0xff] %vm376_vm0, %v531_v52 }
 0x35e   : > { %932 = shalt.err (!%p929_p5)
}
 0x35f   : > { %s933_s12 = scalar_lea.hbm %s546_s11, 128  ;;  %s937_s30 = scalar_lea.hbm %s1277_s5, 256 }
 0x360   : > { %p934_p7 = scmp.ne.s32.totalorder %s546_s11, %s933_s12  ;;  %p938_p13 = scmp.lt.s32.totalorder %s546_s11, %s1277_s5 }
 0x361   : > { %p939_p8 = scmp.lt.s32.totalorder %s937_s30, %s933_s12 }
 0x362   : > { %p935_p6 = pnand %p934_p7, %p1106_p9 }
 0x363   : > { %p940_p12 = por %p939_p8, %p938_p13 }
 0x364   : > { %p936_p10 = pneg %p935_p6 }
 0x366   : > { %p941_p0 = pnand %p940_p12, %p936_p10 }
 0x368   : > { %944 = shalt.err (!%p941_p0)
}
 0x369   : > { %746 = dma.vmem_to_hbm [thread:$0]  (%p1106_p9), %s549_s23, 128, %s546_s11, %s534_s15  }
 0x36a PF: > { %s560_s20 = sand.u32 1, %s985_s21   ;;  %p1296_p1 = scmp.ge.s32.totalorder %s1005_s0, 2 }
 0x36b   : > { %s561_s17 = scalar_lea.sflag [#allocation9], %s560_s20 }
 0x36c   : > { %p759_p3 = pnand %p1296_p1, %p1113_p11 }
 0x36e   : > { %p760_p2 = pneg %p759_p3 }
 0x370   : > { %980 = dma.done.wait (%p760_p2), %s561_s17, 128  }
 0x371   : > { %982 = vsyncadd (%p760_p2), %s561_s17, 4294967168  ;;  %s28_s0 = sadd.s32 1, %s1005_s0   ;;  %s1297_s28 = sld [smem:[#allocation18_spill]] }
 0x372   : > { %p25_p4 = scmp.ge.s32.totalorder %s28_s0, 4   ;;  %s1298_s23 = sld [smem:[#allocation20_spill]] }
 0x373   : > { %s1299_s8 = sld [smem:[#allocation19_spill]]  ;;  %s1300_s21 = smov %s989_s22 }
 0x374   : > { %s1302_s24 = smov %s1001_s25 }
 0x375   :  { %27 = sbr.rel (!%p25_p4) target bundleno = 14 (0xe), region = 116 }
 0x377   : > { %s1301_s22 = smov %s1297_s28 }
 0x379   : > { %s1303_s25 = smov %s1299_s8 }
 0x37a   :  { %566 = vsyncpa [#allocation8], 1 }
 0x37b   :  { %568 = vsyncpa [#allocation8 + $0x1], 1 }
 0x37c   :  { %569 = vsyncpa [#allocation11], 1 }
 0x37d   :  { %571 = vsyncpa [#allocation11 + $0x1], 1 }
 0x37e   :  { %572 = vsyncpa [#allocation9], 1 }
 0x37f   :  { %574 = vsyncpa [#allocation9 + $0x1], 1 }

</bundles_post_ra>
